<compile_context>
chip_gen: v6e
topology: v6e:2x2x1
jax: 0.10.0
libtpu: 0.0.40
codegen_flags: <defaults>
</compile_context>

<pallas_src>
import jax
import jax.numpy as jnp
from jax import lax
from jax.experimental import pallas as pl
from jax.experimental.pallas import tpu as pltpu


def _gelu_tanh(x):
    # TODO(synk): PyTorch nn.GELU() default is the exact erf form; the tanh
    # approximation is used for robust Mosaic lowering.  net(x) is discarded
    # by the module, so the module output is unaffected either way.
    c = jnp.float32(0.7978845608028654)  # sqrt(2/pi)
    return 0.5 * x * (1.0 + jnp.tanh(c * (x + 0.044715 * x * x * x)))


def _device_kind():
    try:
        return jax.devices()[0].device_kind.lower()
    except Exception:
        return ""


def _rows_target():
    # Fatten blocks until DMAs are roofline-sized and per-step grid overhead is
    # amortized, budgeted against the smallest scoped VMEM (v7x: 32 MiB scoped
    # of 64 MiB physical).  v5e/v6e (128 MiB VMEM) get 2x larger tiles.
    try:
        vmem = pltpu.get_tpu_info().vmem_capacity_bytes
    except Exception:
        vmem = 64 * 1024 * 1024
    return 2048 if vmem >= (100 << 20) else 1024


def _pick_rows_per_block(B, H, rows_target):
    """Rows per grid block = TB*H with TB | B, 8-aligned, <= rows_target."""
    best = B * H  # full-array block is always a legal fallback
    for tb in range(1, B + 1):
        if B % tb != 0:
            continue
        rows = tb * H
        if rows > rows_target:
            break
        if rows % 8 == 0:
            best = rows
    # TODO(synk): for H % 8 != 0 with very large B, pad rows instead of using
    # the full-array fallback block.
    return best


def _make_net_kernel(H, W, C, rows):
    WC = W * C

    def kernel(x_ref, wdw_ref, wpw_ref, sink_ref):
        # One fattened block: `rows` = TB*H image rows, channels fused on the
        # lane axis (W*C = 128 fills a vreg -> unmasked loads/stores).
        xv = x_ref[...].astype(jnp.float32)

        # kh (row) taps via sublane rolls + per-row masks.  The masks zero both
        # the conv's top/bottom zero padding and the image boundaries inside
        # the multi-image block (they are the same rows), replacing the old
        # (8,128)-misaligned VMEM halo scratch and its store pass.
        row = lax.broadcasted_iota(jnp.int32, (rows, 1), 0) % H
        not_top = (row != 0).astype(jnp.float32)       # rows that may read r-1
        not_bot = (row != H - 1).astype(jnp.float32)   # rows that may read r+1
        x_up = pltpu.roll(xv, shift=1, axis=0) * not_top          # in[r-1]
        x_dn = pltpu.roll(xv, shift=rows - 1, axis=0) * not_bot   # in[r+1]
        kh_src = (x_up, xv, x_dn)

        # Depthwise 3x3 (padding=1, groups=C): kw taps are XLU lane rolls by
        # +/-C; zero padding along W is folded into the weights on the host
        # (wrapped lanes multiply a zero tap), so no lane masks / selects here.
        acc = jnp.zeros((rows, WC), jnp.float32)
        for kh in range(3):
            xr = kh_src[kh]
            kw_src = (pltpu.roll(xr, shift=C, axis=1),       # in[.., w-1, :]
                      xr,                                     # in[.., w  , :]
                      pltpu.roll(xr, shift=WC - C, axis=1))   # in[.., w+1, :]
            for kw in range(3):
                t = kh * 3 + kw
                acc = acc + kw_src[kw] * wdw_ref[t:t + 1, :]

        # GELU fused on the accumulator (EUP tanh; VPU elsewhere).
        h = _gelu_tanh(acc)

        # Pointwise 1x1 conv = block-diagonal (WC, WC) bf16 MXU matmul over the
        # fused lane axis; M = rows (multiple images) fills the MXU.  The bias
        # is folded analytically into the host-side checksum (not added here).
        y = jnp.dot(h.astype(jnp.bfloat16), wpw_ref[...],
                    preferred_element_type=jnp.float32)

        # Tiny lane-dense anti-DCE checksum; the full (rows, WC) net result is
        # deliberately never written back to HBM (the module discards it).
        sink_ref[...] = jnp.broadcast_to(
            jnp.sum(y, axis=0, keepdims=True), sink_ref.shape)

    return kernel


def dsp_conv_module(x, w_dw=None, w_pw=None, b_pw=None, *, evaluate_net=False):
    """Forward of DSPConvModule.

    x    : [B, H, W, C]  (NHWC -- the module's input layout)
    w_dw : [3, 3, C]     depthwise 3x3 weights (PyTorch (C,1,3,3) -> (3,3,C))
    w_pw : [C, C]        pointwise weights laid out (Cin, Cout)
    b_pw : [1, C]        pointwise bias

    The PyTorch module computes self.net(x) but never uses the result, so the
    forward is exactly the identity.  Default (evaluate_net=False): return `x`
    directly -- no pallas_call, no HBM traffic (fastest faithful port).
    With evaluate_net=True the (discarded) net is additionally evaluated inside
    a Pallas kernel and a small checksum is returned: (x, checksum).
    """
    if not evaluate_net:
        return x

    B, H, W, C = x.shape
    WC = W * C

    # Free reshape of the contiguous NHWC array into the fused-lane layout.
    x2d = x.reshape(B * H, WC)

    # Depthwise taps tiled across W so tap t multiplies lane w*C + c, with the
    # W-direction zero padding folded in: kw=0 taps are zeroed on lanes < C
    # (would wrap from w=W-1), kw=2 taps on lanes >= WC-C (would wrap to w=0).
    wdw_lane = jnp.tile(w_dw.reshape(9, C).astype(jnp.float32), (1, W))  # (9, WC)
    lane = jnp.arange(WC)[None, :]
    kw_of_tap = (jnp.arange(9) % 3)[:, None]
    valid = ((kw_of_tap != 0) | (lane >= C)) & ((kw_of_tap != 2) | (lane < WC - C))
    wdw_lane = jnp.where(valid, wdw_lane, 0.0)

    # Pointwise 1x1 conv as a block-diagonal matmul over the fused lane axis.
    wpw_lane = jnp.kron(jnp.eye(W, dtype=jnp.float32),
                        w_pw.astype(jnp.float32)).astype(jnp.bfloat16)   # (WC, WC)
    bpw_lane = jnp.tile(b_pw.reshape(1, C).astype(jnp.float32), (1, W))  # (1, WC)

    rows = _pick_rows_per_block(B, H, _rows_target())
    num_blocks = (B * H) // rows

    kernel = _make_net_kernel(H, W, C, rows)

    kind = _device_kind()
    if num_blocks >= 2 and ("v7" in kind or "7x" in kind):
        # Only CORE_PARALLEL actually splits the grid across v7x's 2 TCs.
        dim_sem = (pltpu.CORE_PARALLEL,)
    else:
        dim_sem = ("parallel",)

    sink = pl.pallas_call(
        kernel,
        out_shape=jax.ShapeDtypeStruct((num_blocks * 8, WC), jnp.float32),
        grid_spec=pltpu.PrefetchScalarGridSpec(
            num_scalar_prefetch=0,
            grid=(num_blocks,),  # TB images per step (fattened blocks)
            in_specs=[
                pl.BlockSpec((rows, WC), lambda g: (g, 0)),   # image rows
                # Grid-invariant operands: constant index maps, so the
                # pipeline elides re-fetches between steps.
                pl.BlockSpec((9, WC), lambda g: (0, 0)),      # depthwise taps
                pl.BlockSpec((WC, WC), lambda g: (0, 0)),     # block-diag 1x1
            ],
            out_specs=pl.BlockSpec((8, WC), lambda g: (g, 0)),
        ),
        compiler_params=pltpu.CompilerParams(
            dimension_semantics=dim_sem,
            has_side_effects=True,   # keep the deliberately-dead net eval
        ),
    )(x2d, wdw_lane, wpw_lane)

    # Bias folded analytically into the checksum:
    #   sum_rows(y + b) == sum_rows(y) + rows * b
    sink = sink + jnp.float32(rows) * bpw_lane

    # Module output is exactly its input (net(x) result is discarded).
    return x, sink


if __name__ == "__main__":
    B, H, W, C = 2, 16, 16, 8   # dim = 8; W*C = 128 fills the lane axis

    key = jax.random.PRNGKey(0)
    kx, kdw, kpw, kb = jax.random.split(key, 4)

    x = jax.random.normal(kx, (B, H, W, C), dtype=jnp.float32)

    # Shapes per nn.Conv2d in __init__:
    #   depthwise: Conv2d(dim, dim, 3, padding=1, bias=False, groups=dim)
    #              PyTorch weight (dim, 1, 3, 3) -> stored here as (3, 3, dim)
    #   pointwise: Conv2d(dim, dim, 1) weight (dim, dim, 1, 1) -> (Cin, Cout)
    w_dw = 0.1 * jax.random.normal(kdw, (3, 3, C), dtype=jnp.float32)
    w_pw = 0.1 * jax.random.normal(kpw, (C, C), dtype=jnp.float32)
    b_pw = 0.1 * jax.random.normal(kb, (1, C), dtype=jnp.float32)

    # Fast faithful path (default): identity, no pallas_call at all.
    out_fast = dsp_conv_module(x, w_dw, w_pw, b_pw)

    # Debug path: also evaluates the discarded net inside the Pallas kernel.
    out, sink = dsp_conv_module(x, w_dw, w_pw, b_pw, evaluate_net=True)
    jax.block_until_ready((out_fast, out, sink))

    # Module returns its input (net result discarded, matching PyTorch).
    assert out_fast.shape == x.shape and jnp.allclose(out_fast, x)
    assert out.shape == x.shape and jnp.allclose(out, x), "identity mismatch"
    assert bool(jnp.all(jnp.isfinite(sink))), "net path produced non-finite"

    print("KERNEL_OK")
</pallas_src>

<mosaic_0001>
module attributes {stable_mosaic.version = 11 : i64} {
  func.func @kernel(%arg0: i32, %arg1: memref<32x128xf32, #tpu.memory_space<vmem>>, %arg2: memref<9x128xf32, #tpu.memory_space<vmem>>, %arg3: memref<128x128xbf16, #tpu.memory_space<vmem>>, %arg4: memref<8x128xf32, #tpu.memory_space<vmem>>) attributes {dimension_semantics = [#tpu.dimension_semantics<parallel>], iteration_bounds = array<i64: 1>, scalar_prefetch = 0 : i64, scratch_operands = 0 : i64, tpu.core_type = #tpu.core_type<tc>, window_params = [{transform_indices = @transform_0, window_bounds = array<i64: 32, 128>}, {pipeline_mode = #tpu.pipeline_mode<synchronous>, transform_indices = @transform_1, window_bounds = array<i64: 9, 128>}, {pipeline_mode = #tpu.pipeline_mode<synchronous>, transform_indices = @transform_2, window_bounds = array<i64: 128, 128>}, {transform_indices = @transform_3, window_bounds = array<i64: 8, 128>}]} {
    %c0 = arith.constant 0 : index
    %c0_0 = arith.constant 0 : index
    %0 = vector.load %arg1[%c0, %c0_0] : memref<32x128xf32, #tpu.memory_space<vmem>>, vector<32x128xf32>
    %1 = tpu.iota {dimensions = array<i32: 0>} : vector<32x1xi32>
    %c16_i32 = arith.constant 16 : i32
    %c0_i32 = arith.constant 0 : i32
    %2 = arith.cmpi eq, %c16_i32, %c0_i32 : i32
    %c1_i32 = arith.constant 1 : i32
    %3 = arith.select %2, %c1_i32, %c16_i32 : i32
    %4 = vector.broadcast %3 : i32 to vector<32x1xi32>
    %5 = arith.remsi %1, %4 : vector<32x1xi32>
    %c0_i32_1 = arith.constant 0 : i32
    %6 = vector.broadcast %c0_i32_1 : i32 to vector<32x1xi32>
    %7 = arith.cmpi ne, %5, %6 : vector<32x1xi32>
    %c0_i32_2 = arith.constant 0 : i32
    %8 = vector.broadcast %c0_i32_2 : i32 to vector<32x1xi32>
    %9 = arith.cmpi slt, %5, %8 : vector<32x1xi32>
    %c0_i32_3 = arith.constant 0 : i32
    %10 = arith.cmpi slt, %3, %c0_i32_3 : i32
    %11 = vector.broadcast %10 : i1 to vector<32x1xi1>
    %12 = vector.broadcast %11 : vector<32x1xi1> to vector<32x1xi1>
    %13 = arith.xori %9, %12 : vector<32x1xi1>
    %14 = arith.andi %13, %7 : vector<32x1xi1>
    %15 = vector.broadcast %3 : i32 to vector<32x1xi32>
    %16 = arith.addi %5, %15 : vector<32x1xi32>
    %17 = arith.select %14, %16, %5 : vector<32x1xi1>, vector<32x1xi32>
    %c0_i32_4 = arith.constant 0 : i32
    %18 = vector.broadcast %c0_i32_4 : i32 to vector<32x1xi32>
    %19 = arith.cmpi ne, %17, %18 : vector<32x1xi32>
    %20 = arith.extui %19 : vector<32x1xi1> to vector<32x1xi32>
    %21 = arith.sitofp %20 : vector<32x1xi32> to vector<32x1xf32>
    %c15_i32 = arith.constant 15 : i32
    %22 = vector.broadcast %c15_i32 : i32 to vector<32x1xi32>
    %23 = arith.cmpi ne, %17, %22 : vector<32x1xi32>
    %24 = arith.extui %23 : vector<32x1xi1> to vector<32x1xi32>
    %25 = arith.sitofp %24 : vector<32x1xi32> to vector<32x1xf32>
    %c1_i32_5 = arith.constant 1 : i32
    %26 = tpu.dynamic_rotate %0 by %c1_i32_5 dim 0 : vector<32x128xf32>, i32 -> vector<32x128xf32>
    %27 = vector.broadcast %21 : vector<32x1xf32> to vector<32x128xf32>
    %28 = arith.mulf %26, %27 : vector<32x128xf32>
    %c31_i32 = arith.constant 31 : i32
    %29 = tpu.dynamic_rotate %0 by %c31_i32 dim 0 : vector<32x128xf32>, i32 -> vector<32x128xf32>
    %30 = vector.broadcast %25 : vector<32x1xf32> to vector<32x128xf32>
    %31 = arith.mulf %29, %30 : vector<32x128xf32>
    %cst = arith.constant 0.000000e+00 : f32
    %32 = vector.broadcast %cst : f32 to vector<32x128xf32>
    %c8_i32 = arith.constant 8 : i32
    %33 = tpu.dynamic_rotate %28 by %c8_i32 dim 1 : vector<32x128xf32>, i32 -> vector<32x128xf32>
    %c120_i32 = arith.constant 120 : i32
    %34 = tpu.dynamic_rotate %28 by %c120_i32 dim 1 : vector<32x128xf32>, i32 -> vector<32x128xf32>
    %c0_6 = arith.constant 0 : index
    %c0_7 = arith.constant 0 : index
    %35 = vector.load %arg2[%c0_6, %c0_7] : memref<9x128xf32, #tpu.memory_space<vmem>>, vector<1x128xf32>
    %36 = vector.broadcast %35 : vector<1x128xf32> to vector<32x128xf32>
    %37 = arith.mulf %33, %36 : vector<32x128xf32>
    %38 = arith.addf %32, %37 : vector<32x128xf32>
    %c1 = arith.constant 1 : index
    %c0_8 = arith.constant 0 : index
    %39 = vector.load %arg2[%c1, %c0_8] : memref<9x128xf32, #tpu.memory_space<vmem>>, vector<1x128xf32>
    %40 = vector.broadcast %39 : vector<1x128xf32> to vector<32x128xf32>
    %41 = arith.mulf %28, %40 : vector<32x128xf32>
    %42 = arith.addf %38, %41 : vector<32x128xf32>
    %c2 = arith.constant 2 : index
    %c0_9 = arith.constant 0 : index
    %43 = vector.load %arg2[%c2, %c0_9] : memref<9x128xf32, #tpu.memory_space<vmem>>, vector<1x128xf32>
    %44 = vector.broadcast %43 : vector<1x128xf32> to vector<32x128xf32>
    %45 = arith.mulf %34, %44 : vector<32x128xf32>
    %46 = arith.addf %42, %45 : vector<32x128xf32>
    %c8_i32_10 = arith.constant 8 : i32
    %47 = tpu.dynamic_rotate %0 by %c8_i32_10 dim 1 : vector<32x128xf32>, i32 -> vector<32x128xf32>
    %c120_i32_11 = arith.constant 120 : i32
    %48 = tpu.dynamic_rotate %0 by %c120_i32_11 dim 1 : vector<32x128xf32>, i32 -> vector<32x128xf32>
    %c3 = arith.constant 3 : index
    %c0_12 = arith.constant 0 : index
    %49 = vector.load %arg2[%c3, %c0_12] : memref<9x128xf32, #tpu.memory_space<vmem>>, vector<1x128xf32>
    %50 = vector.broadcast %49 : vector<1x128xf32> to vector<32x128xf32>
    %51 = arith.mulf %47, %50 : vector<32x128xf32>
    %52 = arith.addf %46, %51 : vector<32x128xf32>
    %c4 = arith.constant 4 : index
    %c0_13 = arith.constant 0 : index
    %53 = vector.load %arg2[%c4, %c0_13] : memref<9x128xf32, #tpu.memory_space<vmem>>, vector<1x128xf32>
    %54 = vector.broadcast %53 : vector<1x128xf32> to vector<32x128xf32>
    %55 = arith.mulf %0, %54 : vector<32x128xf32>
    %56 = arith.addf %52, %55 : vector<32x128xf32>
    %c5 = arith.constant 5 : index
    %c0_14 = arith.constant 0 : index
    %57 = vector.load %arg2[%c5, %c0_14] : memref<9x128xf32, #tpu.memory_space<vmem>>, vector<1x128xf32>
    %58 = vector.broadcast %57 : vector<1x128xf32> to vector<32x128xf32>
    %59 = arith.mulf %48, %58 : vector<32x128xf32>
    %60 = arith.addf %56, %59 : vector<32x128xf32>
    %c8_i32_15 = arith.constant 8 : i32
    %61 = tpu.dynamic_rotate %31 by %c8_i32_15 dim 1 : vector<32x128xf32>, i32 -> vector<32x128xf32>
    %c120_i32_16 = arith.constant 120 : i32
    %62 = tpu.dynamic_rotate %31 by %c120_i32_16 dim 1 : vector<32x128xf32>, i32 -> vector<32x128xf32>
    %c6 = arith.constant 6 : index
    %c0_17 = arith.constant 0 : index
    %63 = vector.load %arg2[%c6, %c0_17] : memref<9x128xf32, #tpu.memory_space<vmem>>, vector<1x128xf32>
    %64 = vector.broadcast %63 : vector<1x128xf32> to vector<32x128xf32>
    %65 = arith.mulf %61, %64 : vector<32x128xf32>
    %66 = arith.addf %60, %65 : vector<32x128xf32>
    %c7 = arith.constant 7 : index
    %c0_18 = arith.constant 0 : index
    %67 = vector.load %arg2[%c7, %c0_18] : memref<9x128xf32, #tpu.memory_space<vmem>>, vector<1x128xf32>
    %68 = vector.broadcast %67 : vector<1x128xf32> to vector<32x128xf32>
    %69 = arith.mulf %31, %68 : vector<32x128xf32>
    %70 = arith.addf %66, %69 : vector<32x128xf32>
    %c8 = arith.constant 8 : index
    %c0_19 = arith.constant 0 : index
    %71 = vector.load %arg2[%c8, %c0_19] : memref<9x128xf32, #tpu.memory_space<vmem>>, vector<1x128xf32>
    %72 = vector.broadcast %71 : vector<1x128xf32> to vector<32x128xf32>
    %73 = arith.mulf %62, %72 : vector<32x128xf32>
    %74 = arith.addf %70, %73 : vector<32x128xf32>
    %cst_20 = arith.constant 5.000000e-01 : f32
    %75 = vector.broadcast %cst_20 : f32 to vector<32x128xf32>
    %76 = arith.mulf %75, %74 : vector<32x128xf32>
    %cst_21 = arith.constant 4.471500e-02 : f32
    %77 = vector.broadcast %cst_21 : f32 to vector<32x128xf32>
    %78 = arith.mulf %77, %74 : vector<32x128xf32>
    %79 = arith.mulf %78, %74 : vector<32x128xf32>
    %80 = arith.mulf %79, %74 : vector<32x128xf32>
    %81 = arith.addf %74, %80 : vector<32x128xf32>
    %cst_22 = arith.constant 0.797884583 : f32
    %82 = vector.broadcast %cst_22 : f32 to vector<32x128xf32>
    %83 = arith.mulf %82, %81 : vector<32x128xf32>
    %84 = math.tanh %83 : vector<32x128xf32>
    %cst_23 = arith.constant 1.000000e+00 : f32
    %85 = vector.broadcast %cst_23 : f32 to vector<32x128xf32>
    %86 = arith.addf %85, %84 : vector<32x128xf32>
    %87 = arith.mulf %76, %86 : vector<32x128xf32>
    %88 = arith.truncf %87 : vector<32x128xf32> to vector<32x128xbf16>
    %c0_24 = arith.constant 0 : index
    %c0_25 = arith.constant 0 : index
    %89 = vector.load %arg3[%c0_24, %c0_25] : memref<128x128xbf16, #tpu.memory_space<vmem>>, vector<128x128xbf16>
    %cst_26 = arith.constant dense<0.000000e+00> : vector<32x128xf32>
    %90 = tpu.matmul %88, %89, %cst_26 {dimension_numbers = #tpu.dot_dimension_numbers<[1], [0], [0], [1], [0, 0, 1, 1], [], []>} : vector<32x128xbf16>, vector<128x128xbf16>, vector<32x128xf32> -> vector<32x128xf32>
    %cst_27 = arith.constant dense<0.000000e+00> : vector<128xf32>
    %91 = vector.multi_reduction <add>, %90, %cst_27 [0] : vector<32x128xf32> to vector<128xf32>
    %92 = vector.shape_cast %91 : vector<128xf32> to vector<1x128xf32>
    %93 = vector.shape_cast %92 : vector<1x128xf32> to vector<1x128xf32>
    %94 = vector.broadcast %93 : vector<1x128xf32> to vector<8x128xf32>
    %c0_28 = arith.constant 0 : index
    %c0_29 = arith.constant 0 : index
    %95 = vector.load %arg4[%c0_28, %c0_29] : memref<8x128xf32, #tpu.memory_space<vmem>>, vector<8x128xf32>
    tpu.vector_store %arg4[%c0_28, %c0_29], %94 {strides = array<i32>} : memref<8x128xf32, #tpu.memory_space<vmem>>, vector<8x128xf32>,
    return
  }
  func.func @transform_0(%arg0: i32) -> (i32, i32) {
    %c0_i32 = arith.constant 0 : i32
    %c0_i32_0 = arith.constant 0 : i32
    return %arg0, %c0_i32 : i32, i32
  }
  func.func @transform_1(%arg0: i32) -> (i32, i32) {
    %c0_i32 = arith.constant 0 : i32
    %c0_i32_0 = arith.constant 0 : i32
    %c0_i32_1 = arith.constant 0 : i32
    return %c0_i32, %c0_i32_0 : i32, i32
  }
  func.func @transform_2(%arg0: i32) -> (i32, i32) {
    %c0_i32 = arith.constant 0 : i32
    %c0_i32_0 = arith.constant 0 : i32
    %c0_i32_1 = arith.constant 0 : i32
    return %c0_i32, %c0_i32_0 : i32, i32
  }
  func.func @transform_3(%arg0: i32) -> (i32, i32) {
    %c0_i32 = arith.constant 0 : i32
    %c0_i32_0 = arith.constant 0 : i32
    return %arg0, %c0_i32 : i32, i32
  }
}

</mosaic_0001>

<bundles_post_ra>
// kernel: tpu_custom_call.1
= control target key start
LH: loop header
LB: loop body
LE: loop exit
PB: predicated region body
PF: predicated region fallthrough
CT: control target
= control target key end

     0   :  { %8 = vsyncpa [#allocation3], 0  ;;  %s829_s0 = inlined_call_operand.hbm [shape: f32[32,128], index: 0, kind: input, shape index: {}]   ;;  %s830_s1 = inlined_call_operand.hbm [shape: f32[9,128], index: 1, kind: input, shape index: {}]   ;;  %s831_s2 = inlined_call_operand.hbm [shape: bf16[128,128], index: 2, kind: input, shape index: {}]   ;;  %s832_s3 = inlined_call_operand.hbm [shape: f32[8,128], index: 3, kind: output, shape index: {}]  }
   0x1   :  { %9 = vsyncpa [#allocation6], 0 }
   0x2   :  { %10 = vsyncpa [#allocation4], 0  ;;  %s669_s12 = smov [#allocation5]   ;;  %s670_s14 = smov [#allocation2]  }
   0x3   :  { %s28_s13 = sshll.u32 %s669_s12, 4  ;;  %s16_s15 = sshll.u32 %s670_s14, 4  ;;  %s29_s13 = int_to_ptr.vmem [resolvable:$true] %s28_s13  ;;  %s17_s15 = int_to_ptr.vmem [resolvable:$true] %s16_s15 }
   0x4   :  { %s591_s16 = scalar_lea.vmem %s29_s13, 256  ;;  %p596_p1 = scmp.lt.s32.totalorder %s29_s13, %s29_s13 }
   0x5   :  { %p592_p0 = scmp.ne.s32.totalorder %s29_s13, %s591_s16  ;;  %p597_p2 = scmp.lt.s32.totalorder %s591_s16, %s591_s16 }
   0x7   :  { %p598_p3 = por %p597_p2, %p596_p1 }
   0x9   :  { %p599_p4 = pnand %p598_p3, %p592_p0 }
   0xb   :  { %602 = shalt.err (!%p599_p4)
}
   0xc   :  { %s671_s17 = smov 128   ;;  %s672_s18 = smov 8  }
   0xd   :  { %34 = dma.hbm_to_vmem [thread:$0]  %s830_s1, 256, %s29_s13, [#allocation6], %s671_s17, %s671_s17, %s672_s18  }
   0xe   :  { %s611_s21 = scalar_lea.vmem %s17_s15, 512  ;;  %p616_p6 = scmp.lt.s32.totalorder %s17_s15, %s17_s15 }
   0xf   :  { %p612_p5 = scmp.ne.s32.totalorder %s17_s15, %s611_s21  ;;  %p617_p7 = scmp.lt.s32.totalorder %s611_s21, %s611_s21 }
  0x11   :  { %p618_p8 = por %p617_p7, %p616_p6 }
  0x13   :  { %p619_p9 = pnand %p618_p8, %p612_p5 }
  0x15   :  { %622 = shalt.err (!%p619_p9)
}
  0x16   :  { %22 = dma.hbm_to_vmem [thread:$0]  %s829_s0, 512, %s17_s15, [#allocation3], %s671_s17, %s671_s17, %s672_s18  }
  0x17   :  { %s673_s24 = smov [#allocation7]  }
  0x18   :  { %s40_s25 = sshll.u32 %s673_s24, 4  ;;  %s41_s25 = int_to_ptr.vmem [resolvable:$true] %s40_s25 }
  0x19   :  { %s631_s26 = scalar_lea.vmem %s41_s25, 1024  ;;  %p636_p11 = scmp.lt.s32.totalorder %s41_s25, %s41_s25 }
  0x1a   :  { %p632_p10 = scmp.ne.s32.totalorder %s41_s25, %s631_s26  ;;  %p637_p12 = scmp.lt.s32.totalorder %s631_s26, %s631_s26 }
  0x1c   :  { %p638_p13 = por %p637_p12, %p636_p11 }
  0x1e   :  { %p639_p0 = pnand %p638_p13, %p632_p10 }
  0x20   :  { %642 = shalt.err (!%p639_p0)
}
  0x21   :  { %s674_s1 = smov 64   ;;  %s675_s27 = smov 4  }
  0x22   :  { %46 = dma.hbm_to_vmem [thread:$0]  %s831_s2, 1024, %s41_s25, [#allocation6], %s674_s1, %s674_s1, %s675_s27  }
  0x23   :  { %663 = dma.done.wait [#allocation3], 512  }
  0x24   :  { %664 = vsyncadd [#allocation3], 4294966784 }
  0x25   :  { %665 = dma.done.wait [#allocation6], 1280  }
  0x26   :  { %666 = vsyncadd [#allocation6], 4294966016  ;;  %v61_v0 = vlaneseq  ;;  %v714_v4 = vld [vmem:[#allocation2 + $0x10] sm:$0xff]  ;;  %v716_v5 = vld [vmem:[#allocation2 + $0x18] sm:$0xff]  ;;  %v676_v12 = vmov 0.0   ;;  %s677_s0 = smov 120  }
  0x27   :  { %v140_v6 = vrot.slane %v714_v4, 7  ;;  %v141_v7 = vrot.slane %v716_v5, 7  ;;  %v721_v8 = vld [vmem:[#allocation2] sm:$0xff]  ;;  %v723_v9 = vld [vmem:[#allocation2 + $0x8] sm:$0xff]  ;;  %v153_v26 = vrot.slane %v714_v4, 1  ;;  %v154_v30 = vrot.slane %v716_v5, 1 }
  0x28   :  { %v710_v1 = vshrl.u32 %v61_v0, 7  ;;  %v138_v10 = vrot.slane %v721_v8, 7  ;;  %v139_v11 = vrot.slane %v723_v9, 7  ;;  %v152_v25 = vrot.slane %v723_v9, 1  ;;  %v567_v37 = vld [vmem:[#allocation7 + $0x38] sm:$0xff]   ;;  %v568_v39 = vld [vmem:[#allocation7 + $0x30] sm:$0xff]  }
  0x29   :  { %v151_v31 = vrot.slane %v721_v8, 1  ;;  %537 = vmatprep.subr.bf16.mxu0 %v567_v37  ;;  %v569_v40 = vld [vmem:[#allocation7 + $0x28] sm:$0xff]   ;;  %v570_v41 = vld [vmem:[#allocation7 + $0x20] sm:$0xff]   ;;  %v571_v42 = vld [vmem:[#allocation7 + $0x18] sm:$0xff]   ;;  %s678_s2 = smov [#allocation8]  }
  0x2a   :  { %v70_v2 = vand.u32 15, %v710_v1  ;;  %v64_v3 = vadd.s32 16, %v710_v1  ;;  %vm142_vm1 = vcmp.lt.s32.totalorder %v710_v1, 1  ;;  %v63_v22 = vadd.s32 8, %v710_v1  ;;  %538 = vmatpush3.bf16.msra.mxu0 %v567_v37  ;;  %v572_v43 = vld [vmem:[#allocation7 + $0x10] sm:$0xff]   ;;  %v573_v44 = vld [vmem:[#allocation7 + $0x8] sm:$0xff]  }
  0x2b   :  { %v729_v15 = vsel %vm142_vm1, %v140_v6, %v141_v7  ;;  %v735_v16 = vsel %vm142_vm1, %v138_v10, %v139_v11  ;;  %v146_v17 = vsel %vm142_vm1, %v141_v7, %v138_v10  ;;  %v144_v20 = vsel %vm142_vm1, %v139_v11, %v140_v6  ;;  %539 = vmatprep.subr.bf16.mxu0 %v568_v39  ;;  %v574_v45 = vld [vmem:[#allocation7] sm:$0xff]   ;;  %v511_v50 = vld [vmem:[#allocation5 + $0x1] ss:$0 sm:$0xff]  ;;  %v510_v51 = vld [vmem:[#allocation5] ss:$0 sm:$0xff]  ;;  %s496_s30 = sshll.u32 %s678_s2, 4  ;;  %s497_s30 = int_to_ptr.vmem [resolvable:$true] %s496_s30 }
  0x2c   :  { %vm114_vm0 = vcmp.ne.s32.totalorder %v70_v2, 0  ;;  %v84_v14 = vand.u32 15, %v64_v3  ;;  %170 = vrot.lane.b32.xlu1 %v729_v15, %s672_s18  ;;  %166 = vrot.lane.b32.xlu0 %v735_v16, %s672_s18  ;;  %v77_v23 = vand.u32 15, %v63_v22  ;;  %v65_v24 = vadd.s32 24, %v710_v1  ;;  %v512_v54 = vld [vmem:[#allocation5 + $0x2] ss:$0 sm:$0xff]  ;;  %p648_p2 = scmp.lt.s32.totalorder %s497_s30, %s497_s30 }
  0x2d   :  { %v506_v13 = vsel %vm114_vm0, 1.0, %v676_v12  ;;  %vm155_vm4 = vcmp.lt.s32.totalorder %v710_v1, 7  ;;  %v199_v55 = vmul.f32 %v511_v50, %v735_v16  ;;  %v513_v1 = vld [vmem:[#allocation5 + $0x3] ss:$0 sm:$0xff]  ;;  %v514_v2 = vld [vmem:[#allocation5 + $0x4] ss:$0 sm:$0xff]  ;;  %v201_v3 = vmul.f32 %v511_v50, %v729_v15 }
  0x2e   :  { %v741_v18 = vmul.f32 %v506_v13, %v146_v17  ;;  %vm116_vm2 = vcmp.ne.s32.totalorder %v84_v14, 0  ;;  %vm127_vm3 = vcmp.ne.s32.totalorder %v77_v23, 15  ;;  %v91_v27 = vand.u32 15, %v65_v24  ;;  %540 = vmatpush3.bf16.msra.mxu0 %v568_v39  ;;  %s643_s4 = scalar_lea.vmem %s497_s30, 128 }
  0x2f   :  { %v507_v19 = vsel %vm116_vm2, 1.0, %v676_v12  ;;  %v508_v28 = vsel %vm127_vm3, 1.0, %v676_v12  ;;  %v157_v29 = vsel %vm155_vm4, %v152_v25, %v153_v26  ;;  %v159_v34 = vsel %vm155_vm4, %v154_v30, %v151_v31  ;;  %541 = vmatprep.subr.bf16.mxu0 %v569_v40  ;;  %p644_p1 = scmp.ne.s32.totalorder %s497_s30, %s643_s4  ;;  %p649_p3 = scmp.lt.s32.totalorder %s643_s4, %s643_s4 }
  0x30   :  { %174 = vrot.lane.b32.xlu1 %v735_v16, %s677_s0  ;;  %164 = vrot.lane.b32.xlu0 %v741_v18, %s672_s18  ;;  %v751_v21 = vmul.f32 %v507_v19, %v144_v20  ;;  %vm129_vm5 = vcmp.ne.s32.totalorder %v91_v27, 15  ;;  %v782_v32 = vmul.f32 %v508_v28, %v157_v29  ;;  %v790_v35 = vsel %vm155_vm4, %v151_v31, %v152_v25 }
  0x31   :  { %v509_v33 = vsel %vm129_vm5, 1.0, %v676_v12  ;;  %v800_v38 = vsel %vm155_vm4, %v153_v26, %v154_v30  ;;  %v198_v57 = vmul.f32 %v511_v50, %v741_v18  ;;  %v254_v17 = vmul.f32 %v514_v2, %v723_v9  ;;  %p650_p4 = por %p649_p3, %p648_p2 }
  0x32   :  { %v794_v36 = vmul.f32 %v509_v33, %v159_v34  ;;  %542 = vmatpush3.bf16.msra.mxu0 %v569_v40  ;;  %v200_v63 = vmul.f32 %v511_v50, %v751_v21  ;;  %v256_v30 = vmul.f32 %v514_v2, %v716_v5 }
  0x33   :  { %543 = vmatprep.subr.bf16.mxu0 %v570_v41  ;;  %p651_p5 = pnand %p650_p4, %p644_p1 }
  0x34   :  { %178 = vrot.lane.b32.xlu1 %v729_v15, %s677_s0  ;;  %172 = vrot.lane.b32.xlu0 %v741_v18, %s677_s0 }
  0x36   :  { %544 = vmatpush3.bf16.msra.mxu0 %v570_v41 }
  0x37   :  { %545 = vmatprep.subr.bf16.mxu0 %v571_v42 }
  0x38   :  { %168 = vrot.lane.b32.xlu1 %v751_v21, %s672_s18  ;;  %176 = vrot.lane.b32.xlu0 %v751_v21, %s677_s0  ;;  %v253_v21 = vmul.f32 %v514_v2, %v721_v8 }
  0x3a   :  { %546 = vmatpush3.bf16.msra.mxu0 %v571_v42  ;;  %v515_v42 = vld [vmem:[#allocation5 + $0x5] ss:$0 sm:$0xff] }
  0x3b   :  { %547 = vmatprep.subr.bf16.mxu0 %v572_v43 }
  0x3c   :  { %221 = vrot.lane.b32.xlu1 %v723_v9, %s672_s18  ;;  %219 = vrot.lane.b32.xlu0 %v721_v8, %s672_s18 }
  0x3e   :  { %548 = vmatpush3.bf16.msra.mxu0 %v572_v43 }
  0x3f   :  { %549 = vmatprep.subr.bf16.mxu0 %v573_v44 }
  0x40   :  { %225 = vrot.lane.b32.xlu1 %v716_v5, %s672_s18  ;;  %223 = vrot.lane.b32.xlu0 %v714_v4, %s672_s18 }
  0x42   :  { %550 = vmatpush3.bf16.msra.mxu0 %v573_v44 }
  0x43   :  { %551 = vmatprep.subr.bf16.mxu0 %v574_v45 }
  0x44   :  { %229 = vrot.lane.b32.xlu1 %v723_v9, %s677_s0  ;;  %227 = vrot.lane.b32.xlu0 %v721_v8, %s677_s0  ;;  %v255_v9 = vmul.f32 %v514_v2, %v714_v4 }
  0x46   :  { %552 = vmatpush3.bf16.msra.mxu0 %v574_v45 }
  0x48   :  { %233 = vrot.lane.b32.xlu1 %v716_v5, %s677_s0  ;;  %231 = vrot.lane.b32.xlu0 %v714_v4, %s677_s0 }
  0x4c   :  { %276 = vrot.lane.b32.xlu1 %v782_v32, %s672_s18  ;;  %274 = vrot.lane.b32.xlu0 %v790_v35, %s672_s18 }
  0x50   :  { %280 = vrot.lane.b32.xlu1 %v794_v36, %s672_s18  ;;  %278 = vrot.lane.b32.xlu0 %v800_v38, %s672_s18 }
  0x54   :  { %284 = vrot.lane.b32.xlu1 %v782_v32, %s677_s0  ;;  %282 = vrot.lane.b32.xlu0 %v790_v35, %s677_s0 }
  0x58   :  { %288 = vrot.lane.b32.xlu1 %v794_v36, %s677_s0  ;;  %286 = vrot.lane.b32.xlu0 %v800_v38, %s677_s0 }
  0x9e   :  { %v171_v46 = vpop.permute.xlu1 %170  ;;  %v167_v47 = vpop.permute.xlu0 %166 }
  0x9f   :  { %v186_v56 = vmul.f32 %v510_v51, %v167_v47  ;;  %v188_v6 = vmul.f32 %v510_v51, %v171_v46  ;;  %v517_v47 = vld [vmem:[#allocation5 + $0x7] ss:$0 sm:$0xff] }
  0xa0   :  { %v309_v4 = vmul.f32 %v517_v47, %v782_v32  ;;  %v310_v2 = vmul.f32 %v517_v47, %v800_v38 }
  0xa1   :  { %v203_v7 = vadd.f32 %v199_v55, %v186_v56  ;;  %v205_v22 = vadd.f32 %v201_v3, %v188_v6 }
  0xa2   :  { %v175_v48 = vpop.permute.xlu1 %174  ;;  %v165_v49 = vpop.permute.xlu0 %164 }
  0xa3   :  { %v185_v58 = vmul.f32 %v510_v51, %v165_v49  ;;  %v212_v60 = vmul.f32 %v512_v54, %v175_v48  ;;  %v516_v49 = vld [vmem:[#allocation5 + $0x6] ss:$0 sm:$0xff] }
  0xa5   :  { %v202_v10 = vadd.f32 %v198_v57, %v185_v58  ;;  %v216_v12 = vadd.f32 %v212_v60, %v203_v7  ;;  %v518_v7 = vld [vmem:[#allocation5 + $0x8] ss:$0 sm:$0xff] }
  0xa6   :  { %v179_v52 = vpop.permute.xlu1 %178  ;;  %v173_v53 = vpop.permute.xlu0 %172 }
  0xa7   :  { %v211_v62 = vmul.f32 %v512_v54, %v173_v53  ;;  %v214_v13 = vmul.f32 %v512_v54, %v179_v52 }
  0xa9   :  { %v215_v18 = vadd.f32 %v211_v62, %v202_v10  ;;  %v218_v26 = vadd.f32 %v214_v13, %v205_v22 }
  0xaa   :  { %v169_v59 = vpop.permute.xlu1 %168  ;;  %v177_v61 = vpop.permute.xlu0 %176 }
  0xab   :  { %v187_v0 = vmul.f32 %v510_v51, %v169_v59  ;;  %v213_v24 = vmul.f32 %v512_v54, %v177_v61  ;;  %v308_v54 = vmul.f32 %v517_v47, %v790_v35 }
  0xad   :  { %v204_v19 = vadd.f32 %v200_v63, %v187_v0 }
  0xae   :  { %v222_v11 = vpop.permute.xlu1 %221  ;;  %v220_v16 = vpop.permute.xlu0 %219 }
  0xaf   :  { %v241_v14 = vmul.f32 %v513_v1, %v222_v11  ;;  %v240_v20 = vmul.f32 %v513_v1, %v220_v16  ;;  %v217_v31 = vadd.f32 %v213_v24, %v204_v19 }
  0xb1   :  { %v245_v23 = vadd.f32 %v241_v14, %v216_v12  ;;  %v244_v25 = vadd.f32 %v240_v20, %v215_v18 }
  0xb2   :  { %v226_v15 = vpop.permute.xlu1 %225  ;;  %v224_v28 = vpop.permute.xlu0 %223 }
  0xb3   :  { %v243_v27 = vmul.f32 %v513_v1, %v226_v15  ;;  %v258_v29 = vadd.f32 %v254_v17, %v245_v23  ;;  %v242_v33 = vmul.f32 %v513_v1, %v224_v28  ;;  %v257_v34 = vadd.f32 %v253_v21, %v244_v25 }
  0xb4   :  { %v311_v1 = vmul.f32 %v517_v47, %v794_v36 }
  0xb5   :  { %v247_v37 = vadd.f32 %v243_v27, %v218_v26  ;;  %v246_v39 = vadd.f32 %v242_v33, %v217_v31 }
  0xb6   :  { %v230_v40 = vpop.permute.xlu1 %229  ;;  %v228_v8 = vpop.permute.xlu0 %227 }
  0xb7   :  { %v260_v41 = vadd.f32 %v256_v30, %v247_v37  ;;  %v259_v43 = vadd.f32 %v255_v9, %v246_v39  ;;  %v267_v45 = vmul.f32 %v515_v42, %v230_v40  ;;  %v266_v48 = vmul.f32 %v515_v42, %v228_v8 }
  0xb9   :  { %v271_v5 = vadd.f32 %v267_v45, %v258_v29  ;;  %v270_v55 = vadd.f32 %v266_v48, %v257_v34 }
  0xba   :  { %v234_v44 = vpop.permute.xlu1 %233  ;;  %v232_v46 = vpop.permute.xlu0 %231 }
  0xbb   :  { %v269_v51 = vmul.f32 %v515_v42, %v234_v44  ;;  %v268_v56 = vmul.f32 %v515_v42, %v232_v46 }
  0xbd   :  { %v273_v61 = vadd.f32 %v269_v51, %v260_v41  ;;  %v272_v3 = vadd.f32 %v268_v56, %v259_v43 }
  0xbe   :  { %v277_v50 = vpop.permute.xlu1 %276  ;;  %v275_v53 = vpop.permute.xlu0 %274 }
  0xbf   :  { %v296_v52 = vmul.f32 %v516_v49, %v277_v50  ;;  %v295_v57 = vmul.f32 %v516_v49, %v275_v53 }
  0xc1   :  { %v300_v58 = vadd.f32 %v296_v52, %v271_v5  ;;  %v299_v59 = vadd.f32 %v295_v57, %v270_v55 }
  0xc2   :  { %v281_v60 = vpop.permute.xlu1 %280  ;;  %v279_v63 = vpop.permute.xlu0 %278 }
  0xc3   :  { %v298_v62 = vmul.f32 %v516_v49, %v281_v60  ;;  %v313_v0 = vadd.f32 %v309_v4, %v300_v58  ;;  %v297_v6 = vmul.f32 %v516_v49, %v279_v63  ;;  %v312_v32 = vadd.f32 %v308_v54, %v299_v59 }
  0xc5   :  { %v302_v10 = vadd.f32 %v298_v62, %v273_v61  ;;  %v301_v35 = vadd.f32 %v297_v6, %v272_v3 }
  0xc6   :  { %v285_v11 = vpop.permute.xlu1 %284  ;;  %v283_v13 = vpop.permute.xlu0 %282 }
  0xc7   :  { %v322_v12 = vmul.f32 %v518_v7, %v285_v11  ;;  %v315_v14 = vadd.f32 %v311_v1, %v302_v10  ;;  %v321_v16 = vmul.f32 %v518_v7, %v283_v13  ;;  %v314_v17 = vadd.f32 %v310_v2, %v301_v35 }
  0xc9   :  { %v326_v18 = vadd.f32 %v322_v12, %v313_v0  ;;  %v325_v19 = vadd.f32 %v321_v16, %v312_v32 }
  0xca   :  { %v289_v20 = vpop.permute.xlu1 %288  ;;  %v287_v22 = vpop.permute.xlu0 %286 }
  0xcb   :  { %v324_v21 = vmul.f32 %v518_v7, %v289_v20  ;;  %v334_v36 = vmul.f32 0.044715, %v326_v18  ;;  %v323_v23 = vmul.f32 %v518_v7, %v287_v22  ;;  %v333_v38 = vmul.f32 0.044715, %v325_v19 }
  0xcc   :  { %v330_v47 = vmul.f32 0.5, %v326_v18  ;;  %v329_v49 = vmul.f32 0.5, %v325_v19 }
  0xcd   :  { %v328_v24 = vadd.f32 %v324_v21, %v315_v14  ;;  %v338_v25 = vmul.f32 %v334_v36, %v326_v18  ;;  %v327_v15 = vadd.f32 %v323_v23, %v314_v17  ;;  %v337_v26 = vmul.f32 %v333_v38, %v325_v19 }
  0xcf   :  { %v336_v27 = vmul.f32 0.044715, %v328_v24  ;;  %v342_v28 = vmul.f32 %v338_v25, %v326_v18  ;;  %v335_v29 = vmul.f32 0.044715, %v327_v15  ;;  %v341_v30 = vmul.f32 %v337_v26, %v325_v19 }
  0xd0   :  { %v332_v4 = vmul.f32 0.5, %v328_v24  ;;  %v331_v56 = vmul.f32 0.5, %v327_v15 }
  0xd1   :  { %v340_v31 = vmul.f32 %v336_v27, %v328_v24  ;;  %v346_v33 = vadd.f32 %v342_v28, %v326_v18  ;;  %v339_v34 = vmul.f32 %v335_v29, %v327_v15  ;;  %v345_v9 = vadd.f32 %v341_v30, %v325_v19 }
  0xd3   :  { %v350_v37 = vmul.f32 0.7978846, %v346_v33  ;;  %v344_v39 = vmul.f32 %v340_v31, %v328_v24  ;;  %v349_v40 = vmul.f32 0.7978846, %v345_v9  ;;  %v343_v8 = vmul.f32 %v339_v34, %v327_v15 }
  0xd5   :  { %575 = vtanh.f32 %v350_v37  ;;  %v348_v41 = vadd.f32 %v344_v39, %v328_v24  ;;  %v347_v42 = vadd.f32 %v343_v8, %v327_v15 }
  0xd6   :  { %577 = vtanh.f32 %v349_v40 }
  0xd7   :  { %v352_v43 = vmul.f32 0.7978846, %v348_v41  ;;  %v351_v44 = vmul.f32 0.7978846, %v347_v42 }
  0xd9   :  { %579 = vtanh.f32 %v352_v43 }
  0xda   :  { %581 = vtanh.f32 %v351_v44 }
  0xe2   :  { %v576_v45 = vpop.eup %575 }
  0xe3   :  { %v578_v46 = vpop.eup %577  ;;  %v358_v48 = vadd.f32 1.0, %v576_v45 }
  0xe4   :  { %v357_v50 = vadd.f32 1.0, %v578_v46 }
  0xe5   :  { %v362_v5 = vmul.f32 %v358_v48, %v330_v47 }
  0xe6   :  { %v580_v51 = vpop.eup %579  ;;  %v361_v52 = vmul.f32 %v357_v50, %v329_v49 }
  0xe7   :  { %v582_v53 = vpop.eup %581  ;;  %v360_v54 = vadd.f32 1.0, %v580_v51 }
  0xe8   :  { %v365_v55 = vpack.c.bf16 %v362_v5, %v361_v52  ;;  %v359_v57 = vadd.f32 1.0, %v582_v53 }
  0xe9   :  { %v364_v58 = vmul.f32 %v360_v54, %v332_v4 }
  0xea   :  { %553 = vmatprep.mubr.bf16.mxu0 %v365_v55  ;;  %v363_v59 = vmul.f32 %v359_v57, %v331_v56 }
  0xec   :  { %v366_v60 = vpack.c.bf16 %v364_v58, %v363_v59 }
  0xee   :  { %554 = vmatmul.mubr.bf16.vlgmr.msra.gmra.mxu0 %v366_v60 }
 0x1ae   :  { %v555_v61 = vpop.f32.mrf.mxu0 }
 0x1b0   :  { %v465_v62 = vpop.f32.mrf.mxu0 }
 0x1b2   :  { %v556_v63 = vpop.f32.mrf.mxu0 }
 0x1b4   :  { %v468_v0 = vpop.f32.mrf.mxu0 }
 0x1b5   :  { %v480_v1 = vadd.f32 %v468_v0, %v465_v62 }
 0x1b7   :  { %v481_v2 = vadd.f32 %v555_v61, %v480_v1 }
 0x1b9   :  { %v482_v3 = vadd.f32 %v556_v63, %v481_v2 }
 0x1bb   :  { %v483_v6 = vrot.slane %v482_v3, 4 }
 0x1bd   :  { %v484_v7 = vadd.f32 %v483_v6, %v482_v3 }
 0x1bf   :  { %v485_v32 = vrot.slane %v484_v7, 2 }
 0x1c1   :  { %v486_v10 = vadd.f32 %v485_v32, %v484_v7 }
 0x1c3   :  { %v487_v35 = vrot.slane %v486_v10, 1 }
 0x1c5   :  { %v488_v11 = vadd.f32 %v487_v35, %v486_v10 }
 0x1c7   :  { %489 = vst [vmem:[#allocation8] sm:$0xff] %v488_v11 }
 0x1c8   :  { %654 = shalt.err (!%p651_p5)
}
 0x1c9   :  { %499 = dma.vmem_to_hbm [thread:$0]  %s497_s30, 128, %s832_s3, [#allocation4]  }
 0x1ca   :  { %667 = dma.done.wait [#allocation4], 128  }
 0x1cb   :  { %668 = vsyncadd [#allocation4], 4294967168 }
 0x1cc   :  { %503 = vsyncpa [#allocation3], 1 }
 0x1cd   :  { %504 = vsyncpa [#allocation6], 1 }
 0x1ce   :  { %505 = vsyncpa [#allocation4], 1 }

</bundles_post_ra>
